<compile_context>
chip_gen: v6e
topology: v6e:2x2x1
jax: 0.10.0
libtpu: 0.0.40
codegen_flags: <defaults>
</compile_context>

<pallas_src>
import jax
import jax.numpy as jnp
from jax.experimental import pallas as pl
from jax.experimental.pallas import tpu as pltpu


def _mlp_kernel(x_ref, w1_ref, b1_ref, w2_ref, b2_ref, o_ref):
    """out_tile = relu(x @ w1 + b1) @ w2_tile + b2_tile."""
    # Layer 1 (+ ReLU) on the VMEM-resident x/w1/b1.  Recomputing it per N
    # tile adds no HBM traffic and keeps the N axis safely "parallel" for
    # megacore sharding (a program_id-guarded h cache would be wrong there).
    h = jnp.dot(x_ref[...], w1_ref[...], preferred_element_type=jnp.float32)
    h = jnp.maximum(h + b1_ref[...], 0.0)                # (B, H) + (1, H)
    # Layer 2 on the streamed (H, tn) weight tile.
    o = jnp.dot(h.astype(jnp.bfloat16), w2_ref[...],
                preferred_element_type=jnp.float32)
    o_ref[...] = (o + b2_ref[...]).astype(o_ref.dtype)


def _round_up(x, m):
    return (x + m - 1) // m * m


def _vmem_budget_bytes():
    """Usable VMEM this generation (physical capacity with ~25% headroom)."""
    try:
        phys = int(pltpu.get_tpu_info().vmem_capacity_bytes)
    except Exception:
        phys = 64 * 1024 * 1024   # v7x physical; conservative for v5e/v6e (128 MiB)
    return (phys * 3) // 4


def _vmem_need_bytes(B, C, H, tn, *, stream_bufs, out_bufs=2):
    """Approximate VMEM footprint of one kernel instance (sublane-padded)."""
    Bp = _round_up(max(B, 1), 8)
    resident = (Bp * C * 2          # x   bf16, single-buffered
                + C * H * 2         # w1  bf16, single-buffered
                + 8 * H * 4)        # b1  f32  ((1,H) pads to 8 sublanes)
    streamed = stream_bufs * (H * tn * 2 + 8 * tn * 4)   # w2 bf16 + b2 f32
    out = out_bufs * Bp * tn * 4
    return resident + streamed + out


def _pick_tn(O_pad, requested, B, C, H, budget, stream_bufs):
    """Largest lane-dense N tile dividing O_pad that fits the VMEM budget,
    preferring an even grid_n so v7x's two TensorCores split the stream."""
    requested = max(128, requested)
    cands = [t for t in range(128, O_pad + 1, 128)
             if O_pad % t == 0 and t <= requested
             and _vmem_need_bytes(B, C, H, t, stream_bufs=stream_bufs) <= budget]
    if not cands:
        return 128
    best = max(cands)
    even = [t for t in cands if (O_pad // t) % 2 == 0]
    if even and 2 * max(even) >= best:   # even TC split is worth <=2x tile shrink
        best = max(even)
    return best


def prefix_mapper_forward(context_vec, params, *, prefix_len, target_dim, tn=2048):
    """context_vec: (B, context_dim). Returns (B, prefix_len, target_dim) f32."""
    w1, b1, w2, b2 = params["w1"], params["b1"], params["w2"], params["b2"]
    B, C = context_vec.shape
    H = w1.shape[1]
    O_pad = w2.shape[1]                    # lane-dense (padded) output width
    O = prefix_len * target_dim
    assert O_pad % 128 == 0 and O_pad >= O, (O_pad, O)

    # Cast once here: halves x DMA bytes and removes a per-tile cast.
    x = context_vec.astype(jnp.bfloat16)

    stream_bufs = 3                        # pipeline depth on streamed w2/b2
    budget = _vmem_budget_bytes()
    tn = _pick_tn(O_pad, tn, B, C, H, budget, stream_bufs)
    grid_n = O_pad // tn

    # Small-problem fast path: if tiling would only give 1-2 grid steps and
    # everything fits VMEM, a single un-gridded block avoids per-step
    # pipeline overhead (~0.35us/step) entirely.
    need_full = _vmem_need_bytes(B, C, H, O_pad, stream_bufs=1, out_bufs=1)
    single_block = grid_n <= 2 and need_full <= budget

    layer1_repeats = 1 if single_block else grid_n
    flops = 2 * B * (C * H * layer1_repeats + H * O_pad)
    bytes_accessed = (x.size * x.dtype.itemsize
                      + w1.size * w1.dtype.itemsize + b1.size * b1.dtype.itemsize
                      + w2.size * w2.dtype.itemsize + b2.size * b2.dtype.itemsize
                      + B * O_pad * 4)
    cost = pl.CostEstimate(flops=flops, transcendentals=0,
                           bytes_accessed=bytes_accessed)

    if single_block:
        vmem_limit = int(max(budget, (need_full * 5) // 4))
        out_flat = pl.pallas_call(
            _mlp_kernel,
            out_shape=jax.ShapeDtypeStruct((B, O_pad), jnp.float32),
            compiler_params=pltpu.CompilerParams(vmem_limit_bytes=vmem_limit),
            cost_estimate=cost,
        )(x, w1, b1, w2, b2)
    else:
        need = _vmem_need_bytes(B, C, H, tn, stream_bufs=stream_bufs)
        vmem_limit = int(max(budget, (need * 5) // 4))
        out_flat = pl.pallas_call(
            _mlp_kernel,
            out_shape=jax.ShapeDtypeStruct((B, O_pad), jnp.float32),
            grid_spec=pltpu.PrefetchScalarGridSpec(
                num_scalar_prefetch=0,
                grid=(grid_n,),
                in_specs=[
                    # Resident operands: constant index_map (never re-fetched),
                    # single-buffered to free VMEM for a larger tn.
                    pl.BlockSpec((B, C), lambda j: (0, 0),
                                 pipeline_mode=pl.Buffered(1)),
                    pl.BlockSpec((C, H), lambda j: (0, 0),
                                 pipeline_mode=pl.Buffered(1)),
                    pl.BlockSpec((1, H), lambda j: (0, 0),
                                 pipeline_mode=pl.Buffered(1)),
                    # Streamed operands: deeper pipelining keeps the next
                    # tiles' DMAs queued (the kernel is DMA-bound).
                    pl.BlockSpec((H, tn), lambda j: (0, j),
                                 pipeline_mode=pl.Buffered(stream_bufs)),
                    pl.BlockSpec((1, tn), lambda j: (0, j),
                                 pipeline_mode=pl.Buffered(stream_bufs)),
                ],
                # Output tile is only B*tn*4 bytes (tiny vs the w2 stream),
                # so the default double-buffering is left in place.
                out_specs=pl.BlockSpec((B, tn), lambda j: (0, j)),
            ),
            compiler_params=pltpu.CompilerParams(
                dimension_semantics=("parallel",),   # megacore split of N
                vmem_limit_bytes=vmem_limit),
            cost_estimate=cost,
        )(x, w1, b1, w2, b2)

    # Drop lane-padding columns, then the module's view(-1, P, T).
    return out_flat[:, :O].reshape(-1, prefix_len, target_dim)


def init_params(key, context_dim, hidden_dim, target_dim, prefix_len):
    """Deterministic synthetic parameters.

    Weights are stored (in_features, out_features), bf16 (full-rate MXU, half
    the weight bytes); the second-layer output dim is zero-padded to a
    multiple of 128 for lane-dense stores.  Biases stay f32 (added after the
    f32 accumulation)."""
    k1, k2, k3, k4 = jax.random.split(key, 4)
    out_dim = target_dim * prefix_len
    out_pad = _round_up(out_dim, 128)
    lim1 = 1.0 / float(context_dim) ** 0.5
    lim2 = 1.0 / float(hidden_dim) ** 0.5
    w1 = jax.random.uniform(k1, (context_dim, hidden_dim), jnp.float32, -lim1, lim1)
    b1 = jax.random.uniform(k2, (1, hidden_dim), jnp.float32, -lim1, lim1)
    w2 = jax.random.uniform(k3, (hidden_dim, out_dim), jnp.float32, -lim2, lim2)
    b2 = jax.random.uniform(k4, (1, out_dim), jnp.float32, -lim2, lim2)
    w2p = jnp.zeros((hidden_dim, out_pad), jnp.float32).at[:, :out_dim].set(w2)
    b2p = jnp.zeros((1, out_pad), jnp.float32).at[:, :out_dim].set(b2)
    return {
        "w1": w1.astype(jnp.bfloat16),
        "b1": b1,
        "w2": w2p.astype(jnp.bfloat16),
        "b2": b2p,
    }


def _reference(x, params, prefix_len, target_dim):
    O = prefix_len * target_dim
    h = jnp.dot(x.astype(jnp.bfloat16), params["w1"],
                preferred_element_type=jnp.float32) + params["b1"]
    h = jnp.maximum(h, 0.0)
    o = jnp.dot(h.astype(jnp.bfloat16), params["w2"],
                preferred_element_type=jnp.float32) + params["b2"]
    return o[:, :O].reshape(-1, prefix_len, target_dim)


if __name__ == "__main__":
    k_x1, k_p1, k_x2, k_p2 = jax.random.split(jax.random.PRNGKey(0), 4)

    # Case 1 — module-like small shapes; exercises the single-block fast path
    # (O = 5*48 = 240 -> padded to 256, so grid_n <= 2 and tiling is skipped).
    batch, context_dim, hidden_dim, target_dim, prefix_len = 4, 64, 128, 48, 5
    x1 = jax.random.normal(k_x1, (batch, context_dim), jnp.float32)
    p1 = init_params(k_p1, context_dim, hidden_dim, target_dim, prefix_len)
    out1 = jax.block_until_ready(
        prefix_mapper_forward(x1, p1, prefix_len=prefix_len, target_dim=target_dim))
    ref1 = _reference(x1, p1, prefix_len, target_dim)
    assert out1.shape == (batch, prefix_len, target_dim), out1.shape
    assert jnp.allclose(out1, ref1, atol=2e-2, rtol=2e-2), "case1 mismatch"

    # Case 2 — forces a small N tile (tn=128, O_pad=512 -> grid_n=4) to
    # exercise the streamed / Buffered(3) pipelined path at small shapes.
    target_dim2, prefix_len2 = 64, 8
    x2 = jax.random.normal(k_x2, (batch, context_dim), jnp.float32)
    p2 = init_params(k_p2, context_dim, hidden_dim, target_dim2, prefix_len2)
    out2 = jax.block_until_ready(
        prefix_mapper_forward(x2, p2, prefix_len=prefix_len2,
                              target_dim=target_dim2, tn=128))
    ref2 = _reference(x2, p2, prefix_len2, target_dim2)
    assert out2.shape == (batch, prefix_len2, target_dim2), out2.shape
    assert jnp.allclose(out2, ref2, atol=2e-2, rtol=2e-2), "case2 mismatch"

    print("KERNEL_OK")
</pallas_src>

<mosaic_0001>
module attributes {stable_mosaic.version = 11 : i64} {
  func.func @_mlp_kernel(%arg0: memref<4x64xbf16, #tpu.memory_space<vmem>>, %arg1: memref<64x128xbf16, #tpu.memory_space<vmem>>, %arg2: memref<1x128xf32, #tpu.memory_space<vmem>>, %arg3: memref<128x256xbf16, #tpu.memory_space<vmem>>, %arg4: memref<1x256xf32, #tpu.memory_space<vmem>>, %arg5: memref<4x256xf32, #tpu.memory_space<vmem>>) attributes {dimension_semantics = [], scalar_prefetch = 0 : i64, scratch_operands = 0 : i64, tpu.core_type = #tpu.core_type<tc>} {
    %c0 = arith.constant 0 : index
    %c0_0 = arith.constant 0 : index
    %0 = vector.load %arg0[%c0, %c0_0] : memref<4x64xbf16, #tpu.memory_space<vmem>>, vector<4x64xbf16>
    %c0_1 = arith.constant 0 : index
    %c0_2 = arith.constant 0 : index
    %1 = vector.load %arg1[%c0_1, %c0_2] : memref<64x128xbf16, #tpu.memory_space<vmem>>, vector<64x128xbf16>
    %cst = arith.constant dense<0.000000e+00> : vector<4x128xf32>
    %2 = tpu.matmul %0, %1, %cst {dimension_numbers = #tpu.dot_dimension_numbers<[1], [0], [0], [1], [0, 0, 1, 1], [], []>} : vector<4x64xbf16>, vector<64x128xbf16>, vector<4x128xf32> -> vector<4x128xf32>
    %c0_3 = arith.constant 0 : index
    %c0_4 = arith.constant 0 : index
    %3 = vector.load %arg2[%c0_3, %c0_4] : memref<1x128xf32, #tpu.memory_space<vmem>>, vector<1x128xf32>
    %4 = vector.broadcast %3 : vector<1x128xf32> to vector<4x128xf32>
    %5 = arith.addf %2, %4 : vector<4x128xf32>
    %cst_5 = arith.constant 0.000000e+00 : f32
    %6 = vector.broadcast %cst_5 : f32 to vector<4x128xf32>
    %7 = arith.maximumf %5, %6 : vector<4x128xf32>
    %8 = arith.truncf %7 : vector<4x128xf32> to vector<4x128xbf16>
    %c0_6 = arith.constant 0 : index
    %c0_7 = arith.constant 0 : index
    %9 = vector.load %arg3[%c0_6, %c0_7] : memref<128x256xbf16, #tpu.memory_space<vmem>>, vector<128x256xbf16>
    %cst_8 = arith.constant dense<0.000000e+00> : vector<4x256xf32>
    %10 = tpu.matmul %8, %9, %cst_8 {dimension_numbers = #tpu.dot_dimension_numbers<[1], [0], [0], [1], [0, 0, 1, 1], [], []>} : vector<4x128xbf16>, vector<128x256xbf16>, vector<4x256xf32> -> vector<4x256xf32>
    %c0_9 = arith.constant 0 : index
    %c0_10 = arith.constant 0 : index
    %11 = vector.load %arg4[%c0_9, %c0_10] : memref<1x256xf32, #tpu.memory_space<vmem>>, vector<1x256xf32>
    %12 = vector.broadcast %11 : vector<1x256xf32> to vector<4x256xf32>
    %13 = arith.addf %10, %12 : vector<4x256xf32>
    %c0_11 = arith.constant 0 : index
    %c0_12 = arith.constant 0 : index
    %14 = vector.load %arg5[%c0_11, %c0_12] : memref<4x256xf32, #tpu.memory_space<vmem>>, vector<4x256xf32>
    tpu.vector_store %arg5[%c0_11, %c0_12], %13 {strides = array<i32>} : memref<4x256xf32, #tpu.memory_space<vmem>>, vector<4x256xf32>,
    return
  }
}

</mosaic_0001>

<bundles_post_ra>
// kernel: tpu_custom_call.1
= control target key start
LH: loop header
LB: loop body
LE: loop exit
PB: predicated region body
PF: predicated region fallthrough
CT: control target
= control target key end

     0   :  { %10 = vsyncpa [#allocation3], 0  ;;  %s540_s0 = inlined_call_operand.hbm [shape: bf16[4,64], index: 0, kind: input, shape index: {}]   ;;  %s541_s1 = inlined_call_operand.hbm [shape: bf16[64,128], index: 1, kind: input, shape index: {}]   ;;  %s542_s2 = inlined_call_operand.vmem [shape: f32[1,128], index: 2, kind: input, shape index: {}]   ;;  %s543_s3 = inlined_call_operand.hbm [shape: bf16[128,256], index: 3, kind: input, shape index: {}]   ;;  %s544_s4 = inlined_call_operand.vmem [shape: f32[1,256], index: 4, kind: input, shape index: {}]   ;;  %s545_s5 = inlined_call_operand.hbm [shape: f32[4,256], index: 5, kind: output, shape index: {}]  }
   0x1   :  { %11 = vsyncpa [#allocation6], 0 }
   0x2   :  { %12 = vsyncpa [#allocation4], 0  ;;  %s481_s18 = smov [#allocation5]  }
   0x3   :  { %s28_s19 = sshll.u32 %s481_s18, 4  ;;  %s29_s19 = int_to_ptr.vmem [resolvable:$true] %s28_s19 }
   0x4   :  { %s403_s20 = scalar_lea.vmem %s29_s19, 512  ;;  %p408_p1 = scmp.lt.s32.totalorder %s29_s19, %s29_s19 }
   0x5   :  { %p404_p0 = scmp.ne.s32.totalorder %s29_s19, %s403_s20  ;;  %p409_p2 = scmp.lt.s32.totalorder %s403_s20, %s403_s20 }
   0x7   :  { %p410_p3 = por %p409_p2, %p408_p1 }
   0x9   :  { %p411_p4 = pnand %p410_p3, %p404_p0 }
   0xb   :  { %414 = shalt.err (!%p411_p4)
}
   0xc   :  { %s482_s21 = smov 64   ;;  %s483_s22 = smov 4  }
   0xd   :  { %34 = dma.hbm_to_vmem [thread:$0]  %s541_s1, 512, %s29_s19, [#allocation6], %s482_s21, %s482_s21, %s483_s22  }
   0xe   :  { %s484_s25 = smov [#allocation2]   ;;  %s485_s27 = smov [#allocation7]  }
   0xf   :  { %s19_s26 = sshll.u32 %s484_s25, 4  ;;  %s42_s28 = sshll.u32 %s485_s27, 4  ;;  %s20_s26 = int_to_ptr.vmem [resolvable:$true] %s19_s26  ;;  %s43_s28 = int_to_ptr.vmem [resolvable:$true] %s42_s28 }
  0x10   :  { %s423_s29 = scalar_lea.vmem %s20_s26, 32  ;;  %p428_p6 = scmp.lt.s32.totalorder %s20_s26, %s20_s26 }
  0x11   :  { %p424_p5 = scmp.ne.s32.totalorder %s20_s26, %s423_s29  ;;  %p429_p7 = scmp.lt.s32.totalorder %s423_s29, %s423_s29 }
  0x13   :  { %p430_p8 = por %p429_p7, %p428_p6 }
  0x15   :  { %p431_p9 = pnand %p430_p8, %p424_p5 }
  0x17   :  { %434 = shalt.err (!%p431_p9)
}
  0x18   :  { %22 = dma.hbm_to_vmem [thread:$0]  %s540_s0, 32, %s20_s26, [#allocation3]  }
  0x19   :  { %s443_s7 = scalar_lea.vmem %s43_s28, 2048  ;;  %p448_p11 = scmp.lt.s32.totalorder %s43_s28, %s43_s28 }
  0x1a   :  { %p444_p10 = scmp.ne.s32.totalorder %s43_s28, %s443_s7  ;;  %p449_p12 = scmp.lt.s32.totalorder %s443_s7, %s443_s7 }
  0x1c   :  { %p450_p13 = por %p449_p12, %p448_p11 }
  0x1e   :  { %p451_p0 = pnand %p450_p13, %p444_p10 }
  0x20   :  { %454 = shalt.err (!%p451_p0)
}
  0x21   :  { %s486_s1 = smov 128   ;;  %s487_s8 = smov 8  }
  0x22   :  { %48 = dma.hbm_to_vmem [thread:$0]  %s543_s3, 2048, %s43_s28, [#allocation6], %s486_s1, %s486_s1, %s487_s8  }
  0x23   :  { %475 = dma.done.wait [#allocation3], 32  }
  0x24   :  { %476 = vsyncadd [#allocation3], 4294967264 }
  0x25   :  { %477 = dma.done.wait [#allocation6], 2560  }
  0x26   :  { %478 = vsyncadd [#allocation6], 4294964736  ;;  %v488_v0 = vmov 0.0   ;;  %vm489_vm0 = vmmov 0   ;;  %v367_v1 = vld [vmem:[#allocation5 + $0x18] sm:$0xff]   ;;  %v368_v2 = vld [vmem:[#allocation5 + $0x10] sm:$0xff]   ;;  %v165_v31 = vlaneseq }
  0x27   :  { %344 = vmatprep.subr.bf16.mxu0 %v488_v0  ;;  %352 = vmatprep.mubr.msk.bf16.mxu0 %vm489_vm0, %v488_v0  ;;  %v371_v3 = vld [vmem:[#allocation7 + $0x74] ss:$8 sps:$4 sm:$0xff]   ;;  %v373_v4 = vld [vmem:[#allocation7 + $0x70] ss:$8 sps:$4 sm:$0xff]   ;;  %v369_v5 = vld [vmem:[#allocation5 + $0x8] sm:$0xff]   ;;  %vm101_vm1 = vcmask 523264  }
  0x28   :  { %345 = vmatpush3.bf16.msra.mxu0 %v367_v1  ;;  %v374_v6 = vld [vmem:[#allocation7 + $0x64] ss:$8 sps:$4 sm:$0xff]   ;;  %255 = vmatprep.subr.bf16.mxu1 %v371_v3  ;;  %v376_v7 = vld [vmem:[#allocation7 + $0x60] ss:$8 sps:$4 sm:$0xff]   ;;  %v377_v8 = vld [vmem:[#allocation7 + $0x54] ss:$8 sps:$4 sm:$0xff]  }
  0x29   :  { %346 = vmatprep.subr.bf16.mxu0 %v488_v0  ;;  %256 = vmatpush1.bf16.msra.mxu1 %v373_v4  ;;  %v370_v9 = vld [vmem:[#allocation5] sm:$0xff]   ;;  %v379_v10 = vld [vmem:[#allocation7 + $0x50] ss:$8 sps:$4 sm:$0xff]   ;;  %v61_v12 = vld [vmem:[#allocation2] sm:$0x3]  ;;  %v490_v22 = vmov 0  }
  0x2a   :  { %257 = vmatprep.subr.bf16.mxu1 %v374_v6  ;;  %v380_v11 = vld [vmem:[#allocation7 + $0x44] ss:$8 sps:$4 sm:$0xff]   ;;  %v382_v13 = vld [vmem:[#allocation7 + $0x40] ss:$8 sps:$4 sm:$0xff]   ;;  %v383_v14 = vld [vmem:[#allocation7 + $0x34] ss:$8 sps:$4 sm:$0xff]   ;;  %287 = vmatprep.mubr.bf16.mxu1 %v490_v22 }
  0x2b   :  { %v385_v15 = vld [vmem:[#allocation7 + $0x30] ss:$8 sps:$4 sm:$0xff]   ;;  %v386_v16 = vld [vmem:[#allocation7 + $0x24] ss:$8 sps:$4 sm:$0xff]   ;;  %v388_v17 = vld [vmem:[#allocation7 + $0x20] ss:$8 sps:$4 sm:$0xff]  }
  0x2c   :  { %347 = vmatpush3.bf16.msra.mxu0 %v368_v2  ;;  %v389_v18 = vld [vmem:[#allocation7 + $0x14] ss:$8 sps:$4 sm:$0xff]   ;;  %v391_v19 = vld [vmem:[#allocation7 + $0x10] ss:$8 sps:$4 sm:$0xff]   ;;  %v392_v20 = vld [vmem:[#allocation7 + $0x4] ss:$8 sps:$4 sm:$0xff]  }
  0x2d   :  { %348 = vmatprep.subr.bf16.mxu0 %v488_v0  ;;  %258 = vmatpush1.bf16.msra.mxu1 %v376_v7  ;;  %v394_v21 = vld [vmem:[#allocation7] ss:$8 sps:$4 sm:$0xff]   ;;  %v317_v23 = vld [vmem:[%s542_s2] ss:$0 sm:$0xff]  ;;  %v166_v32 = vshrl.u32 %v165_v31, 7  ;;  %s491_s2 = smov [#allocation8]  }
  0x2e   :  { %259 = vmatprep.subr.bf16.mxu1 %v377_v8  ;;  %v163_v35 = vld [vmem:[%s544_s4] sm:$0x3]  ;;  %s307_s13 = sshll.u32 %s491_s2, 4  ;;  %s308_s13 = int_to_ptr.vmem [resolvable:$true] %s307_s13 }
  0x2f   :  { %v167_v33 = vsub.s32 0, %v166_v32  ;;  %v171_v34 = vsub.s32 1, %v166_v32  ;;  %s455_s14 = scalar_lea.vmem %s308_s13, 128  ;;  %p460_p2 = scmp.lt.s32.totalorder %s308_s13, %s308_s13 }
  0x30   :  { %349 = vmatpush3.bf16.msra.mxu0 %v369_v5  ;;  %p456_p1 = scmp.ne.s32.totalorder %s308_s13, %s455_s14  ;;  %p461_p3 = scmp.lt.s32.totalorder %s455_s14, %s455_s14 }
  0x31   :  { %350 = vmatprep.subr.bf16.mxu0 %v488_v0  ;;  %260 = vmatpush1.bf16.msra.mxu1 %v379_v10  ;;  %v168_v36 = vrot.slane %v163_v35, %v167_v33  ;;  %v172_v37 = vrot.slane %v163_v35, %v171_v34 }
  0x32   :  { %261 = vmatprep.subr.bf16.mxu1 %v380_v11  ;;  %p462_p4 = por %p461_p3, %p460_p2 }
  0x34   :  { %351 = vmatpush3.bf16.msra.mxu0 %v370_v9  ;;  %p463_p5 = pnand %p462_p4, %p456_p1 }
  0x35   :  { %262 = vmatpush1.bf16.msra.mxu1 %v382_v13 }
  0x36   :  { %263 = vmatprep.subr.bf16.mxu1 %v383_v14 }
  0x37   :  { %353 = vmatmul.mubr.msk.bf16.vlgmr.msra.gmra.mxu0 %vm101_vm1, %v61_v12 }
  0x39   :  { %264 = vmatpush1.bf16.msra.mxu1 %v385_v15 }
  0x3a   :  { %265 = vmatprep.subr.bf16.mxu1 %v386_v16 }
  0x3d   :  { %266 = vmatpush1.bf16.msra.mxu1 %v388_v17 }
  0x3e   :  { %267 = vmatprep.subr.bf16.mxu1 %v389_v18 }
  0x41   :  { %268 = vmatpush1.bf16.msra.mxu1 %v391_v19 }
  0x42   :  { %269 = vmatprep.subr.bf16.mxu1 %v392_v20 }
  0x45   :  { %270 = vmatpush1.bf16.msra.mxu1 %v394_v21 }
  0xf7   :  { %v139_v24 = vpop.f32.mrf.mxu0 }
  0xf8   :  { %v140_v25 = vadd.f32 %v317_v23, %v139_v24 }
  0xf9   :  { %v354_v26 = vpop.f32.mrf.mxu0 }
  0xfa   :  { %v145_v27 = vmax.f32 %v140_v25, 0.0 }
  0xfb   :  { %v142_v28 = vpop.f32.mrf.mxu0 }
  0xfc   :  { %v146_v29 = vpack.c.bf16 %v145_v27, %v145_v27 }
  0xfd   :  { %v355_v30 = vpop.f32.mrf.mxu0 }
  0xfe   :  { %288 = vmatmul.mubr.bf16.vlgmr.msra.gmra.mxu1 %v146_v29 }
 0x1be   :  { %v289_v38 = vpop.f32.mrf.mxu1 }
 0x1bf   :  { %v290_v40 = vadd.f32 %v289_v38, %v168_v36 }
 0x1c0   :  { %v291_v39 = vpop.f32.mrf.mxu1 }
 0x1c1   :  { %v292_v41 = vadd.f32 %v291_v39, %v172_v37 }
 0x1c2   :  { %v293_v42 = vpop.f32.mrf.mxu1 }
 0x1c3   :  { %v298_v43 = vcombine.low %v290_v40, %v292_v41 }
 0x1c4   :  { %v294_v44 = vpop.f32.mrf.mxu1 }
 0x1c5   :  { %300 = vst [vmem:[#allocation8] sm:$0xff] %v298_v43 }
 0x1c6   :  { %466 = shalt.err (!%p463_p5)
}
 0x1c7   :  { %310 = dma.vmem_to_hbm [thread:$0]  %s308_s13, 128, %s545_s5, [#allocation4]  }
 0x1c8   :  { %479 = dma.done.wait [#allocation4], 128  }
 0x1c9   :  { %480 = vsyncadd [#allocation4], 4294967168 }
 0x1ca   :  { %314 = vsyncpa [#allocation3], 1 }
 0x1cb   :  { %315 = vsyncpa [#allocation6], 1 }
 0x1cc   :  { %316 = vsyncpa [#allocation4], 1 }

</bundles_post_ra>
